<compile_context>
chip_gen: v7x
topology: tpu7x:2x2x1
jax: 0.10.0
libtpu: 0.0.40
codegen_flags: <defaults>
</compile_context>

<pallas_src>
import functools

import jax
import jax.numpy as jnp
from jax.experimental import pallas as pl
from jax.experimental.pallas import tpu as pltpu


# ----------------------------------------------------------------------------
# Kernel
# ----------------------------------------------------------------------------
def _custom_op_kernel(x_ref, o_ref, *, compute_dtype):
    x = x_ref[...].astype(compute_dtype)
    xr = jnp.maximum(x, 0)                  # clamp(min=0)
    y = xr / (1 + jnp.exp(-xr))             # exact sigmoid; exp runs on the EUP.
    # NOTE: do NOT use pl.reciprocal(approx=True) here -- the ~2^-12 approx
    # reciprocal would violate the 1e-6 f32 tolerance; exact divide is free
    # since the kernel is HBM-bound.
    o_ref[...] = y.astype(o_ref.dtype)


# ----------------------------------------------------------------------------
# Wrapper
# ----------------------------------------------------------------------------
_SMALL_INPUT_BYTES = 1 << 20  # below this, a fused XLA elementwise op wins


def _device_kind() -> str:
    try:
        return jax.devices()[0].device_kind.lower()
    except Exception:
        return ""


def _reference(x: jnp.ndarray) -> jnp.ndarray:
    xr = jnp.maximum(x, 0)
    return xr / (1 + jnp.exp(-xr))


def custom_op(x: jnp.ndarray, *, force_pallas: bool = False) -> jnp.ndarray:
    """Elementwise relu(x) * sigmoid(relu(x)) via a tiled Pallas TPU kernel."""
    orig_shape = x.shape
    orig_dtype = x.dtype
    total = int(x.size)
    itemsize = jnp.dtype(orig_dtype).itemsize

    if total == 0:
        return x
    if not force_pallas and total * itemsize < _SMALL_INPUT_BYTES:
        # Small-input fast path: kernel launch + layout plumbing would dominate.
        return _reference(x)

    kind = _device_kind()

    # bf16 stays native on v6e/v7x (bf16 VPU/EUP); upcast everywhere else.
    if orig_dtype == jnp.bfloat16 and "v5" not in kind:
        compute_dtype = jnp.bfloat16
    else:
        compute_dtype = jnp.float32

    # Minimum sublane tile: 8 for 4-byte dtypes, 16 for 2-byte, 32 for 1-byte.
    sub = max(8, 32 // itemsize)

    # Widest lane width (multiple of 128) that divides the element count exactly
    # -> lane-dense, unmasked stores, and no wrapper padding.
    lane = None
    for cand in (4096, 2048, 1024, 512, 256, 128):
        if total % cand == 0:
            lane = cand
            break

    if lane is None:
        # TODO(synk): truly ragged sizes (total % 128 != 0): replace this
        # pad + slice (an extra HBM pass each way) with an in-kernel masked
        # store driven by a scalar-prefetched `total` + broadcasted_iota mask.
        lane = 128
        rows = pl.cdiv(total, lane)
        x_flat = jnp.pad(x.reshape(-1), (0, rows * lane - total))
        ragged = True
    else:
        rows = total // lane
        x_flat = x.reshape(-1)
        ragged = False

    x2d = x_flat.reshape(rows, lane)

    # Per-tile HBM footprint target and scoped-VMEM limit, per chip generation.
    if "v7" in kind:
        target_bytes = 8 << 20            # 3.2 TB/s HBM -> big tiles to hide step overhead
        vmem_limit = 48 << 20             # in+out double-buffered at 8 MiB = 32 MiB (<64 MiB phys)
    elif "v6" in kind:
        target_bytes = 4 << 20
        vmem_limit = 32 << 20
    else:                                 # v5e and unknown devices
        target_bytes = 4 << 20
        vmem_limit = 32 << 20             # v5e default scoped VMEM is 16 MiB; raise it explicitly

    if rows <= sub:
        tile_r = rows                     # single full-extent block (valid even if < 8 rows)
    else:
        tile_r_target = max(sub, (target_bytes // (lane * itemsize)) // sub * sub)
        # Keep >=2 grid steps when the input allows it so v7x can stream
        # disjoint row ranges on both TensorCores.
        min_tiles = 2 if rows >= 2 * sub else 1
        tile_r_cap = max(sub, ((rows // min_tiles) // sub) * sub)
        tile_r = min(tile_r_target, tile_r_cap)

    grid = (pl.cdiv(rows, tile_r),)

    kernel = functools.partial(_custom_op_kernel, compute_dtype=compute_dtype)
    cost = pl.CostEstimate(flops=3 * total,
                           transcendentals=total,
                           bytes_accessed=2 * total * itemsize)

    def _call(dim_sem):
        return pl.pallas_call(
            kernel,
            out_shape=jax.ShapeDtypeStruct((rows, lane), orig_dtype),
            grid_spec=pl.GridSpec(
                grid=grid,
                in_specs=[pl.BlockSpec((tile_r, lane), lambda i: (i, 0))],
                out_specs=pl.BlockSpec((tile_r, lane), lambda i: (i, 0)),
            ),
            compiler_params=pltpu.CompilerParams(
                dimension_semantics=dim_sem,
                vmem_limit_bytes=vmem_limit),
            cost_estimate=cost,
        )(x2d)

    if "v7" in kind and grid[0] >= 2:
        # Explicit dual-TensorCore split of the row grid; fall back if rejected.
        try:
            out2d = _call((pltpu.CORE_PARALLEL,))
        except Exception:
            out2d = _call(("parallel",))
    else:
        out2d = _call(("parallel",))

    out = out2d.reshape(-1)
    if ragged:
        out = out[:total]
    return out.reshape(orig_shape)


def model_forward(x: jnp.ndarray) -> jnp.ndarray:
    # Model.forward simply applies the custom op.
    return custom_op(x)


# ----------------------------------------------------------------------------
# Self-test
# ----------------------------------------------------------------------------
if __name__ == "__main__":
    key = jax.random.PRNGKey(0)
    # NCHW input (2*4*16*16 = 2048 elements).
    x = jax.random.normal(key, (2, 4, 16, 16), dtype=jnp.float32)

    # Default path (small input -> fused XLA fast path).
    y_fast = jax.block_until_ready(model_forward(x))
    # Force the Pallas kernel path so the kernel itself is exercised on TPU.
    y_kernel = jax.block_until_ready(custom_op(x, force_pallas=True))

    y_ref = _reference(x)
    assert y_fast.shape == x.shape and y_fast.dtype == x.dtype
    assert y_kernel.shape == x.shape and y_kernel.dtype == x.dtype
    assert jnp.allclose(y_fast, y_ref, atol=1e-6, rtol=1e-6)
    assert jnp.allclose(y_kernel, y_ref, atol=1e-6, rtol=1e-6)

    print("KERNEL_OK")
</pallas_src>

<mosaic_0001>
module attributes {stable_mosaic.version = 11 : i64} {
  func.func @_custom_op_kernel(%arg0: i32, %arg1: memref<1x2048xf32, #tpu.memory_space<vmem>>, %arg2: memref<1x2048xf32, #tpu.memory_space<vmem>>) attributes {dimension_semantics = [#tpu.dimension_semantics<parallel>], iteration_bounds = array<i64: 1>, scalar_prefetch = 0 : i64, scratch_operands = 0 : i64, tpu.core_type = #tpu.core_type<tc>, window_params = [{transform_indices = @transform_0, window_bounds = array<i64: 1, 2048>}, {transform_indices = @transform_1, window_bounds = array<i64: 1, 2048>}]} {
    %c0 = arith.constant 0 : index
    %c0_0 = arith.constant 0 : index
    %0 = vector.load %arg1[%c0, %c0_0] : memref<1x2048xf32, #tpu.memory_space<vmem>>, vector<1x2048xf32>
    %cst = arith.constant 0.000000e+00 : f32
    %1 = vector.broadcast %cst : f32 to vector<1x2048xf32>
    %2 = arith.maximumf %0, %1 : vector<1x2048xf32>
    %cst_1 = arith.constant 0.000000e+00 : f32
    %3 = vector.broadcast %cst_1 : f32 to vector<1x2048xf32>
    %4 = arith.subf %3, %2 : vector<1x2048xf32>
    %5 = math.exp %4 : vector<1x2048xf32>
    %cst_2 = arith.constant 1.000000e+00 : f32
    %6 = vector.broadcast %cst_2 : f32 to vector<1x2048xf32>
    %7 = arith.addf %6, %5 : vector<1x2048xf32>
    %8 = arith.divf %2, %7 : vector<1x2048xf32>
    %c0_3 = arith.constant 0 : index
    %c0_4 = arith.constant 0 : index
    %9 = vector.load %arg2[%c0_3, %c0_4] : memref<1x2048xf32, #tpu.memory_space<vmem>>, vector<1x2048xf32>
    tpu.vector_store %arg2[%c0_3, %c0_4], %8 {strides = array<i32>} : memref<1x2048xf32, #tpu.memory_space<vmem>>, vector<1x2048xf32>,
    return
  }
  func.func @transform_0(%arg0: i32) -> (i32, i32) {
    %c0_i32 = arith.constant 0 : i32
    %c0_i32_0 = arith.constant 0 : i32
    return %arg0, %c0_i32 : i32, i32
  }
  func.func @transform_1(%arg0: i32) -> (i32, i32) {
    %c0_i32 = arith.constant 0 : i32
    %c0_i32_0 = arith.constant 0 : i32
    return %arg0, %c0_i32 : i32, i32
  }
}

</mosaic_0001>

<bundles_post_ra>
// kernel: tpu_custom_call.1
= control target key start
LH: loop header
LB: loop body
LE: loop exit
PB: predicated region body
PF: predicated region fallthrough
CT: control target
= control target key end

     0   :  { %6 = vsyncpa [#allocation3], 0  ;;  %s148_s0 = inlined_call_operand.hbm [shape: f32[1,2048], index: 0, kind: input, shape index: {}]   ;;  %s149_s1 = inlined_call_operand.hbm [shape: f32[1,2048], index: 1, kind: output, shape index: {}]  }
   0x1   :  { %7 = vsyncpa [#allocation4], 0  ;;  %s112_s6 = smov [#allocation2]   ;;  %s64_s10 = scalar_lea.hbm %s148_s0, 256 }
   0x2   :  { %s14_s7 = sshll.u32 %s112_s6, 4  ;;  %p65_p0 = scmp.ne.s32.totalorder %s148_s0, %s64_s10  ;;  %s15_s7 = int_to_ptr.vmem [resolvable:$true] %s14_s7 }
   0x3   :  { %p68_p1 = scmp.lt.u32.totalorder %s64_s10, %s148_s0 }
   0x5   :  { %p70_p2 = pnand %p68_p1, %p65_p0 }
   0x7   :  { %73 = shalt.err (!%p70_p2)
}
   0x8   :  { %s74_s15 = scalar_lea.vmem %s15_s7, 256  ;;  %p79_p4 = scmp.lt.s32.totalorder %s15_s7, %s15_s7 }
   0x9   :  { %p75_p3 = scmp.ne.s32.totalorder %s15_s7, %s74_s15  ;;  %p80_p5 = scmp.lt.s32.totalorder %s74_s15, %s74_s15 }
   0xb   :  { %p81_p6 = por %p80_p5, %p79_p4 }
   0xd   :  { %p82_p7 = pnand %p81_p6, %p75_p3 }
   0xf   :  { %85 = shalt.err (!%p82_p7)
}
  0x10   :  { %17 = dma.hbm_to_vmem [thread:$0]  %s148_s0, 256, %s15_s7, [#allocation3]  }
  0x11   :  { %108 = dma.done.wait [#allocation3], 256  }
  0x12   :  { %109 = vsyncadd [#allocation3], 4294967040  ;;  %v21_v0 = vld [vmem:[#allocation2] sm:$0xff]  ;;  %v22_v1 = vld [vmem:[#allocation2 + $0x8] sm:$0xff]  ;;  %s113_s18 = smov [#allocation5]  }
  0x13   :  { %v23_v2 = vmax.f32 %v21_v0, 0.0  ;;  %v24_v3 = vmax.f32 %v22_v1, 0.0  ;;  %s45_s0 = sshll.u32 %s113_s18, 4  ;;  %s46_s0 = int_to_ptr.vmem [resolvable:$true] %s45_s0 }
  0x14   :  { %s86_s19 = scalar_lea.vmem %s46_s0, 256  ;;  %p91_p9 = scmp.lt.s32.totalorder %s46_s0, %s46_s0 }
  0x15   :  { %v25_v4 = vsub.f32 0.0, %v23_v2  ;;  %v26_v5 = vsub.f32 0.0, %v24_v3  ;;  %p87_p8 = scmp.ne.s32.totalorder %s46_s0, %s86_s19  ;;  %p92_p10 = scmp.lt.s32.totalorder %s86_s19, %s86_s19 }
  0x17   :  { %v27_v6 = vmul.f32 1.442695, %v25_v4  ;;  %v29_v7 = vmul.f32 1.442695, %v26_v5  ;;  %p93_p11 = por %p92_p10, %p91_p9 }
  0x19   :  { %56 = vpow2.f32 %v27_v6  ;;  %p94_p12 = pnand %p93_p11, %p87_p8 }
  0x1a   :  { %58 = vpow2.f32 %v29_v7 }
  0x23   :  { %v57_v8 = vpop.eup %56 }
  0x24   :  { %v59_v9 = vpop.eup %58  ;;  %v31_v10 = vadd.f32 1.0, %v57_v8 }
  0x25   :  { %v32_v11 = vadd.f32 1.0, %v59_v9 }
  0x26   :  { %60 = vrcp.f32 %v31_v10 }
  0x27   :  { %62 = vrcp.f32 %v32_v11 }
  0x30   :  { %v61_v12 = vpop.eup %60 }
  0x31   :  { %v63_v13 = vpop.eup %62  ;;  %v34_v14 = vmul.f32 %v61_v12, %v23_v2 }
  0x32   :  { %v36_v15 = vmul.f32 %v63_v13, %v24_v3 }
  0x33   :  { %37 = vst [vmem:[#allocation5] sm:$0xff] %v34_v14 }
  0x34   :  { %38 = vst [vmem:[#allocation5 + $0x8] sm:$0xff] %v36_v15 }
  0x35   :  { %97 = shalt.err (!%p94_p12)
}
  0x36   :  { %s98_s22 = scalar_lea.hbm %s149_s1, 256 }
  0x37   :  { %p99_p13 = scmp.ne.s32.totalorder %s149_s1, %s98_s22  ;;  %p102_p0 = scmp.lt.u32.totalorder %s98_s22, %s149_s1 }
  0x39   :  { %p104_p1 = pnand %p102_p0, %p99_p13 }
  0x3b   :  { %107 = shalt.err (!%p104_p1)
}
  0x3c   :  { %48 = dma.vmem_to_hbm [thread:$0]  %s46_s0, 256, %s149_s1, [#allocation4]  }
  0x3d   :  { %110 = dma.done.wait [#allocation4], 256  }
  0x3e   :  { %111 = vsyncadd [#allocation4], 4294967040 }
  0x3f   :  { %52 = vsyncpa [#allocation3], 1 }
  0x40   :  { %53 = vsyncpa [#allocation4], 1 }

</bundles_post_ra>
